<compile_context>
chip_gen: v5e
topology: v5e:2x2
jax: 0.10.0
libtpu: 0.0.40
codegen_flags: <defaults>
</compile_context>

<pallas_src>
import math
import functools

import jax
import jax.numpy as jnp
from jax.experimental import pallas as pl
from jax.experimental.pallas import tpu as pltpu


def mha_kernel(x_ref, wq_ref, wk_ref, wv_ref, wo_ref, bo_ref, o_ref, *, heads):
    x = x_ref[0]                                                    # (N, D)
    n, d = x.shape

    # Broadcast x across heads once (hoisted, tiny); per-head projections are
    # batched matmuls (batch dim = heads), f32 accumulation on the MXU.
    xh = jnp.broadcast_to(x, (heads, n, d))                         # (H, N, D)
    q = jnp.einsum('hnd,hdk->hnk', xh, wq_ref[...],
                   preferred_element_type=jnp.float32)              # (H, N, Hd)
    k = jnp.einsum('hnd,hdk->hnk', xh, wk_ref[...],
                   preferred_element_type=jnp.float32)              # (H, N, Hd)
    v = jnp.einsum('hnd,hdk->hnk', xh, wv_ref[...],
                   preferred_element_type=jnp.float32)              # (H, N, Hd)

    # scores = (q / sqrt(Hd)) @ k^T; the scale is already folded into Wq.
    s = jnp.einsum('hqc,hkc->hqk', q, k,
                   preferred_element_type=jnp.float32)              # (H, N, N)

    # Numerically stable softmax; reciprocal goes to the EUP slot.
    # (approx=True needs the loose tolerance below; use exact divide for parity.)
    s = s - jnp.max(s, axis=-1, keepdims=True)
    e = jnp.exp(s)
    attn = e * pl.reciprocal(jnp.sum(e, axis=-1, keepdims=True), approx=True)

    o_heads = jnp.einsum('hqk,hkc->hqc', attn, v,
                         preferred_element_type=jnp.float32)         # (H, N, Hd)

    # Assemble heads as values: head h -> lanes [h*Hd, (h+1)*Hd), matching
    # torch's .transpose(1, 2).contiguous().view(b, n, d). No VMEM scratch.
    out_flat = jnp.concatenate([o_heads[h] for h in range(heads)], axis=-1)  # (N, D)

    # Output projection + bias (bias broadcasts over rows), f32 accumulation.
    y = jnp.dot(out_flat.astype(wo_ref.dtype), wo_ref[...],
                preferred_element_type=jnp.float32) + bo_ref[...]
    o_ref[0] = y.astype(o_ref.dtype)


def multi_head_attention(x, wq_t, wk_t, wv_t, wo_t, bo, *, heads, compute_dtype=None):
    """x: (B, N, D); w*_t: (D, D) pre-transposed Linear weights; bo: (D,).

    compute_dtype: optionally cast x and the projection weights (e.g. bf16) at
    the pallas_call boundary for the v6e/v7x MXU; accumulation and the softmax
    path stay f32, and the output keeps x.dtype.
    """
    b, n, d = x.shape
    assert d % heads == 0, "dim must be divisible by heads"
    head_dim = d // heads

    # Fold the 1/sqrt(head_dim) softmax scale into Wq (wrapper-side, amortized).
    wq_scaled = wq_t * (1.0 / math.sqrt(head_dim))

    # Per-head weight layout (H, D, Hd): heads become a leading batch axis in
    # the kernel instead of lane-offset slices of a fused projection.
    def per_head(w):
        return w.reshape(d, heads, head_dim).transpose(1, 0, 2)     # (H, D, Hd)

    wq_h, wk_h, wv_h = per_head(wq_scaled), per_head(wk_t), per_head(wv_t)

    if compute_dtype is not None:
        x_in = x.astype(compute_dtype)
        wq_h = wq_h.astype(compute_dtype)
        wk_h = wk_h.astype(compute_dtype)
        wv_h = wv_h.astype(compute_dtype)
        wo_in = wo_t.astype(compute_dtype)
    else:
        x_in, wo_in = x, wo_t

    bo2 = bo.reshape(1, d).astype(jnp.float32)

    kernel = functools.partial(mha_kernel, heads=heads)

    out = pl.pallas_call(
        kernel,
        out_shape=jax.ShapeDtypeStruct((b, n, d), x.dtype),
        grid_spec=pltpu.PrefetchScalarGridSpec(
            num_scalar_prefetch=0,
            grid=(b,),                                   # batch axis -> 2 TCs on v7x
            in_specs=[
                pl.BlockSpec((1, n, d), lambda i: (i, 0, 0)),              # x[b]
                pl.BlockSpec((heads, d, head_dim), lambda i: (0, 0, 0)),   # Wq (resident)
                pl.BlockSpec((heads, d, head_dim), lambda i: (0, 0, 0)),   # Wk (resident)
                pl.BlockSpec((heads, d, head_dim), lambda i: (0, 0, 0)),   # Wv (resident)
                pl.BlockSpec((d, d), lambda i: (0, 0)),                    # Wo (resident)
                pl.BlockSpec((1, d), lambda i: (0, 0)),                    # bo (resident)
            ],
            out_specs=pl.BlockSpec((1, n, d), lambda i: (i, 0, 0)),
        ),
        compiler_params=pltpu.CompilerParams(
            dimension_semantics=("parallel",)),
    )(x_in, wq_h, wk_h, wv_h, wo_in, bo2)

    return out


def reference_mha(x, wq_t, wk_t, wv_t, wo_t, bo, *, heads):
    """Pure-JAX reference mirroring the PyTorch forward (eval mode)."""
    b, n, d = x.shape
    hd = d // heads
    q = x @ wq_t
    k = x @ wk_t
    v = x @ wv_t
    q = q.reshape(b, n, heads, hd).transpose(0, 2, 1, 3)
    k = k.reshape(b, n, heads, hd).transpose(0, 2, 1, 3)
    v = v.reshape(b, n, heads, hd).transpose(0, 2, 1, 3)
    scores = jnp.einsum("bhqd,bhkd->bhqk", q, k) / math.sqrt(hd)
    attn = jax.nn.softmax(scores, axis=-1)
    out = jnp.einsum("bhqk,bhkd->bhqd", attn, v)
    out = out.transpose(0, 2, 1, 3).reshape(b, n, d)
    return out @ wo_t + bo


if __name__ == "__main__":
    # Small shapes consistent with the module: batch=2, seq=8, dim=32, heads=4
    B, N, D, HEADS = 2, 8, 32, 4

    key = jax.random.PRNGKey(0)
    kx, kq, kk, kv, ko, kb = jax.random.split(key, 6)

    x = jax.random.normal(kx, (B, N, D), dtype=jnp.float32)

    # PyTorch nn.Linear weights are (out, in); store them pre-transposed (in, out).
    scale = 1.0 / math.sqrt(D)
    wq_t = jax.random.uniform(kq, (D, D), minval=-scale, maxval=scale, dtype=jnp.float32)
    wk_t = jax.random.uniform(kk, (D, D), minval=-scale, maxval=scale, dtype=jnp.float32)
    wv_t = jax.random.uniform(kv, (D, D), minval=-scale, maxval=scale, dtype=jnp.float32)
    wo_t = jax.random.uniform(ko, (D, D), minval=-scale, maxval=scale, dtype=jnp.float32)
    bo = jax.random.uniform(kb, (D,), minval=-scale, maxval=scale, dtype=jnp.float32)

    ref = reference_mha(x, wq_t, wk_t, wv_t, wo_t, bo, heads=HEADS)

    # f32 path (default; approx reciprocal in softmax -> loose-ish tolerance).
    out = multi_head_attention(x, wq_t, wk_t, wv_t, wo_t, bo, heads=HEADS)
    out = jax.block_until_ready(out)
    assert out.shape == (B, N, D)
    assert jnp.allclose(out, ref, atol=5e-3, rtol=5e-3), "f32 kernel mismatch vs reference"

    # bf16-operand path (v6e/v7x MXU-friendly; softmax path stays f32).
    out_bf16 = multi_head_attention(x, wq_t, wk_t, wv_t, wo_t, bo, heads=HEADS,
                                    compute_dtype=jnp.bfloat16)
    out_bf16 = jax.block_until_ready(out_bf16)
    assert out_bf16.shape == (B, N, D)
    assert jnp.allclose(out_bf16, ref, atol=5e-2, rtol=5e-2), "bf16 kernel mismatch vs reference"

    print("KERNEL_OK")
</pallas_src>

<mosaic_0001>
module attributes {stable_mosaic.version = 11 : i64} {
  func.func @mha_kernel(%arg0: i32, %arg1: memref<1x8x32xf32, #tpu.memory_space<vmem>>, %arg2: memref<4x32x8xf32, #tpu.memory_space<vmem>>, %arg3: memref<4x32x8xf32, #tpu.memory_space<vmem>>, %arg4: memref<4x32x8xf32, #tpu.memory_space<vmem>>, %arg5: memref<32x32xf32, #tpu.memory_space<vmem>>, %arg6: memref<1x32xf32, #tpu.memory_space<vmem>>, %arg7: memref<1x8x32xf32, #tpu.memory_space<vmem>>) attributes {dimension_semantics = [#tpu.dimension_semantics<parallel>], iteration_bounds = array<i64: 2>, scalar_prefetch = 0 : i64, scratch_operands = 0 : i64, tpu.core_type = #tpu.core_type<tc>, window_params = [{transform_indices = @transform_0, window_bounds = array<i64: 1, 8, 32>}, {pipeline_mode = #tpu.pipeline_mode<synchronous>, transform_indices = @transform_1, window_bounds = array<i64: 4, 32, 8>}, {pipeline_mode = #tpu.pipeline_mode<synchronous>, transform_indices = @transform_2, window_bounds = array<i64: 4, 32, 8>}, {pipeline_mode = #tpu.pipeline_mode<synchronous>, transform_indices = @transform_3, window_bounds = array<i64: 4, 32, 8>}, {pipeline_mode = #tpu.pipeline_mode<synchronous>, transform_indices = @transform_4, window_bounds = array<i64: 32, 32>}, {pipeline_mode = #tpu.pipeline_mode<synchronous>, transform_indices = @transform_5, window_bounds = array<i64: 1, 32>}, {transform_indices = @transform_6, window_bounds = array<i64: 1, 8, 32>}]} {
    %c0 = arith.constant 0 : index
    %c0_0 = arith.constant 0 : index
    %c0_1 = arith.constant 0 : index
    %0 = vector.load %arg1[%c0, %c0_0, %c0_1] : memref<1x8x32xf32, #tpu.memory_space<vmem>>, vector<1x8x32xf32>
    %1 = vector.shape_cast %0 : vector<1x8x32xf32> to vector<8x32xf32>
    %2 = vector.shape_cast %1 : vector<8x32xf32> to vector<1x8x32xf32>
    %3 = vector.broadcast %2 : vector<1x8x32xf32> to vector<4x8x32xf32>
    %c0_2 = arith.constant 0 : index
    %c0_3 = arith.constant 0 : index
    %c0_4 = arith.constant 0 : index
    %4 = vector.load %arg2[%c0_2, %c0_3, %c0_4] : memref<4x32x8xf32, #tpu.memory_space<vmem>>, vector<4x32x8xf32>
    "tpu.trace_start"() <{level = 10 : i32, message = "hnd,hdk->hnk"}> : () -> ()
    %cst = arith.constant dense<0.000000e+00> : vector<4x8x8xf32>
    %5 = tpu.matmul %3, %4, %cst {dimension_numbers = #tpu.dot_dimension_numbers<[2], [1], [1], [2], [0, 0, 0, 1, 1, 2], [0], [0]>} : vector<4x8x32xf32>, vector<4x32x8xf32>, vector<4x8x8xf32> -> vector<4x8x8xf32>
    "tpu.trace_stop"() : () -> ()
    %c0_5 = arith.constant 0 : index
    %c0_6 = arith.constant 0 : index
    %c0_7 = arith.constant 0 : index
    %6 = vector.load %arg3[%c0_5, %c0_6, %c0_7] : memref<4x32x8xf32, #tpu.memory_space<vmem>>, vector<4x32x8xf32>
    "tpu.trace_start"() <{level = 10 : i32, message = "hnd,hdk->hnk"}> : () -> ()
    %cst_8 = arith.constant dense<0.000000e+00> : vector<4x8x8xf32>
    %7 = tpu.matmul %3, %6, %cst_8 {dimension_numbers = #tpu.dot_dimension_numbers<[2], [1], [1], [2], [0, 0, 0, 1, 1, 2], [0], [0]>} : vector<4x8x32xf32>, vector<4x32x8xf32>, vector<4x8x8xf32> -> vector<4x8x8xf32>
    "tpu.trace_stop"() : () -> ()
    %c0_9 = arith.constant 0 : index
    %c0_10 = arith.constant 0 : index
    %c0_11 = arith.constant 0 : index
    %8 = vector.load %arg4[%c0_9, %c0_10, %c0_11] : memref<4x32x8xf32, #tpu.memory_space<vmem>>, vector<4x32x8xf32>
    "tpu.trace_start"() <{level = 10 : i32, message = "hnd,hdk->hnk"}> : () -> ()
    %cst_12 = arith.constant dense<0.000000e+00> : vector<4x8x8xf32>
    %9 = tpu.matmul %3, %8, %cst_12 {dimension_numbers = #tpu.dot_dimension_numbers<[2], [1], [1], [2], [0, 0, 0, 1, 1, 2], [0], [0]>} : vector<4x8x32xf32>, vector<4x32x8xf32>, vector<4x8x8xf32> -> vector<4x8x8xf32>
    "tpu.trace_stop"() : () -> ()
    "tpu.trace_start"() <{level = 10 : i32, message = "hqc,hkc->hqk"}> : () -> ()
    %cst_13 = arith.constant dense<0.000000e+00> : vector<4x8x8xf32>
    %10 = tpu.matmul %5, %7, %cst_13 {dimension_numbers = #tpu.dot_dimension_numbers<[2], [2], [1], [1], [0, 0, 0, 1, 1, 1], [0], [0]>} : vector<4x8x8xf32>, vector<4x8x8xf32>, vector<4x8x8xf32> -> vector<4x8x8xf32>
    "tpu.trace_stop"() : () -> ()
    %cst_14 = arith.constant dense<0xFF800000> : vector<4x8xf32>
    %11 = vector.multi_reduction <maximumf>, %10, %cst_14 [2] : vector<4x8x8xf32> to vector<4x8xf32>
    %12 = vector.shape_cast %11 : vector<4x8xf32> to vector<4x8x1xf32>
    %13 = vector.broadcast %12 : vector<4x8x1xf32> to vector<4x8x8xf32>
    %14 = arith.subf %10, %13 : vector<4x8x8xf32>
    %15 = math.exp %14 : vector<4x8x8xf32>
    %cst_15 = arith.constant dense<0.000000e+00> : vector<4x8xf32>
    %16 = vector.multi_reduction <add>, %15, %cst_15 [2] : vector<4x8x8xf32> to vector<4x8xf32>
    %17 = vector.shape_cast %16 : vector<4x8xf32> to vector<4x8x1xf32>
    %18 = tpu.reciprocal %17 {approx = true} : vector<4x8x1xf32> -> vector<4x8x1xf32>
    %19 = vector.broadcast %18 : vector<4x8x1xf32> to vector<4x8x8xf32>
    %20 = arith.mulf %15, %19 : vector<4x8x8xf32>
    "tpu.trace_start"() <{level = 10 : i32, message = "hqk,hkc->hqc"}> : () -> ()
    %cst_16 = arith.constant dense<0.000000e+00> : vector<4x8x8xf32>
    %21 = tpu.matmul %20, %9, %cst_16 {dimension_numbers = #tpu.dot_dimension_numbers<[2], [1], [1], [2], [0, 0, 0, 1, 1, 2], [0], [0]>} : vector<4x8x8xf32>, vector<4x8x8xf32>, vector<4x8x8xf32> -> vector<4x8x8xf32>
    "tpu.trace_stop"() : () -> ()
    %22 = vector.extract_strided_slice %21 {offsets = [0, 0, 0], sizes = [1, 8, 8], strides = [1, 1, 1]} : vector<4x8x8xf32> to vector<1x8x8xf32>
    %23 = vector.shape_cast %22 : vector<1x8x8xf32> to vector<8x8xf32>
    %24 = vector.extract_strided_slice %21 {offsets = [1, 0, 0], sizes = [1, 8, 8], strides = [1, 1, 1]} : vector<4x8x8xf32> to vector<1x8x8xf32>
    %25 = vector.shape_cast %24 : vector<1x8x8xf32> to vector<8x8xf32>
    %26 = vector.extract_strided_slice %21 {offsets = [2, 0, 0], sizes = [1, 8, 8], strides = [1, 1, 1]} : vector<4x8x8xf32> to vector<1x8x8xf32>
    %27 = vector.shape_cast %26 : vector<1x8x8xf32> to vector<8x8xf32>
    %28 = vector.extract_strided_slice %21 {offsets = [3, 0, 0], sizes = [1, 8, 8], strides = [1, 1, 1]} : vector<4x8x8xf32> to vector<1x8x8xf32>
    %29 = vector.shape_cast %28 : vector<1x8x8xf32> to vector<8x8xf32>
    %30 = tpu.concatenate %23, %25, %27, %29 in 1 : vector<8x8xf32>, vector<8x8xf32>, vector<8x8xf32>, vector<8x8xf32> -> vector<8x32xf32>
    %c0_17 = arith.constant 0 : index
    %c0_18 = arith.constant 0 : index
    %31 = vector.load %arg5[%c0_17, %c0_18] : memref<32x32xf32, #tpu.memory_space<vmem>>, vector<32x32xf32>
    %cst_19 = arith.constant dense<0.000000e+00> : vector<8x32xf32>
    %32 = tpu.matmul %30, %31, %cst_19 {dimension_numbers = #tpu.dot_dimension_numbers<[1], [0], [0], [1], [0, 0, 1, 1], [], []>} : vector<8x32xf32>, vector<32x32xf32>, vector<8x32xf32> -> vector<8x32xf32>
    %c0_20 = arith.constant 0 : index
    %c0_21 = arith.constant 0 : index
    %33 = vector.load %arg6[%c0_20, %c0_21] : memref<1x32xf32, #tpu.memory_space<vmem>>, vector<1x32xf32>
    %34 = vector.broadcast %33 : vector<1x32xf32> to vector<8x32xf32>
    %35 = arith.addf %32, %34 : vector<8x32xf32>
    %c0_22 = arith.constant 0 : index
    %c0_23 = arith.constant 0 : index
    %c0_24 = arith.constant 0 : index
    %36 = vector.load %arg7[%c0_22, %c0_23, %c0_24] : memref<1x8x32xf32, #tpu.memory_space<vmem>>, vector<1x8x32xf32>
    %37 = vector.shape_cast %36 : vector<1x8x32xf32> to vector<8x32xf32>
    %38 = vector.shape_cast %35 : vector<8x32xf32> to vector<1x8x32xf32>
    tpu.vector_store %arg7[%c0_22, %c0_23, %c0_24], %38 {strides = array<i32>} : memref<1x8x32xf32, #tpu.memory_space<vmem>>, vector<1x8x32xf32>,
    return
  }
  func.func @transform_0(%arg0: i32) -> (i32, i32, i32) {
    %c0_i32 = arith.constant 0 : i32
    %c0_i32_0 = arith.constant 0 : i32
    %c0_i32_1 = arith.constant 0 : i32
    return %arg0, %c0_i32, %c0_i32_0 : i32, i32, i32
  }
  func.func @transform_1(%arg0: i32) -> (i32, i32, i32) {
    %c0_i32 = arith.constant 0 : i32
    %c0_i32_0 = arith.constant 0 : i32
    %c0_i32_1 = arith.constant 0 : i32
    %c0_i32_2 = arith.constant 0 : i32
    return %c0_i32, %c0_i32_0, %c0_i32_1 : i32, i32, i32
  }
  func.func @transform_2(%arg0: i32) -> (i32, i32, i32) {
    %c0_i32 = arith.constant 0 : i32
    %c0_i32_0 = arith.constant 0 : i32
    %c0_i32_1 = arith.constant 0 : i32
    %c0_i32_2 = arith.constant 0 : i32
    return %c0_i32, %c0_i32_0, %c0_i32_1 : i32, i32, i32
  }
  func.func @transform_3(%arg0: i32) -> (i32, i32, i32) {
    %c0_i32 = arith.constant 0 : i32
    %c0_i32_0 = arith.constant 0 : i32
    %c0_i32_1 = arith.constant 0 : i32
    %c0_i32_2 = arith.constant 0 : i32
    return %c0_i32, %c0_i32_0, %c0_i32_1 : i32, i32, i32
  }
  func.func @transform_4(%arg0: i32) -> (i32, i32) {
    %c0_i32 = arith.constant 0 : i32
    %c0_i32_0 = arith.constant 0 : i32
    %c0_i32_1 = arith.constant 0 : i32
    return %c0_i32, %c0_i32_0 : i32, i32
  }
  func.func @transform_5(%arg0: i32) -> (i32, i32) {
    %c0_i32 = arith.constant 0 : i32
    %c0_i32_0 = arith.constant 0 : i32
    %c0_i32_1 = arith.constant 0 : i32
    return %c0_i32, %c0_i32_0 : i32, i32
  }
  func.func @transform_6(%arg0: i32) -> (i32, i32, i32) {
    %c0_i32 = arith.constant 0 : i32
    %c0_i32_0 = arith.constant 0 : i32
    %c0_i32_1 = arith.constant 0 : i32
    return %arg0, %c0_i32, %c0_i32_0 : i32, i32, i32
  }
}

</mosaic_0001>

<bundles_post_ra>
// kernel: tpu_custom_call.1
= control target key start
LH: loop header
LB: loop body
LE: loop exit
PB: predicated region body
PF: predicated region fallthrough
CT: control target
= control target key end

     0   :  { %11 = vsyncpa [#allocation3], 0  ;;  %s1394_s0 = inlined_call_operand.vmem [shape: f32[2,8,32], index: 0, kind: input, shape index: {}]   ;;  %s1395_s1 = inlined_call_operand.vmem [shape: f32[4,32,8], index: 1, kind: input, shape index: {}]   ;;  %s1396_s2 = inlined_call_operand.vmem [shape: f32[4,32,8], index: 2, kind: input, shape index: {}]   ;;  %s1397_s3 = inlined_call_operand.vmem [shape: f32[4,32,8], index: 3, kind: input, shape index: {}]   ;;  %s1398_s4 = inlined_call_operand.vmem [shape: f32[32,32], index: 4, kind: input, shape index: {}]   ;;  %s1399_s5 = inlined_call_operand.vmem [shape: f32[1,32], index: 5, kind: input, shape index: {}]   ;;  %s1400_s6 = inlined_call_operand.hbm [shape: f32[2,8,32], index: 6, kind: output, shape index: {}]  }
   0x1   :  { %13 = vsyncpa [#allocation3 + $0x1], 0  ;;  %s1101_s21 = smov 0   ;;  %s1103_s22 = smov 0  }
   0x2   :  { %s1105_s23 = smov 0   ;;  %s1107_s24 = smov 0  }
   0x3 LB: > { %s1122_s25 = sadd.s32 4294967295, %s1061_s24   ;;  %s905_s26 = sadd.s32 4294967294, %s1061_s24   ;;  %s1061_s24 = sphi %s1107_s24, %s1406_s24   ;;  %s1057_s23 = sphi %s1105_s23, %s1405_s23   ;;  %s1053_s22 = sphi %s1103_s22, %s1404_s22   ;;  %s1049_s21 = sphi %s1101_s21, %s1403_s21  }
   0x4   : > { %s1126_s27 = sadd.s32 1, %s1061_s24   ;;  %s157_s28 = sadd.s32 1, %s1057_s23 }
   0x5   : > { %s154_s29 = ssub.s32 %s1061_s24, %s1126_s27  ;;  %p167_p0 = scmp.ne.s32.totalorder %s1057_s23, %s1053_s22 }
   0x6   : > { %p155_p1 = scmp.eq.s32.totalorder %s154_s29, 0  ;;  %p168_p2 = scmp.eq.s32.totalorder %s1122_s25, 1 }
   0x7   : > { %p173_p3 = scmp.ne.s32.totalorder %s1053_s22, %s1049_s21  ;;  %p174_p4 = scmp.eq.s32.totalorder %s905_s26, 1 }
   0x8   : > { %s1137_s30 = scalar_select %p155_p1, %s1057_s23, %s157_s28  }
   0x9   : > { %p1139_p5 = por %p168_p2, %p167_p0  ;;  %p1143_p6 = por %p174_p4, %p173_p3 }
   0xa   : > { %p908_p7 = scmp.ge.s32.totalorder %s1061_s24, 1  ;;  %p214_p8 = scmp.lt.s32.totalorder %s1061_s24, 3 }
   0xc   : > { %p215_p9 = pnand %p908_p7, %p214_p8 }
   0xd   : > { %p243_p10 = scmp.lt.s32.totalorder (!%p215_p9), %s1122_s25, 1  ;;  %s1063_s20 = smov (!%p215_p9), 8  }
   0xe   : > { %218 = sbr.rel (%p215_p9) target bundleno = 945 (0x3b1), region = 44  ;;  %s1064_s26 = smov (!%p215_p9), 16  }
   0xf   : > { %s1065_s28 = smov (!%p215_p9), 24   ;;  %s240_s16 = sand.u32 (!%p215_p9), 1, %s1053_s22  }
  0x10   : > { %s937_s18 = sshll.u32 (!%p215_p9), %s1122_s25, 3  ;;  %s831_s12 = scalar_lea.sflag (!%p215_p9), [#allocation3], %s240_s16 }
  0x13   : > { %v255_v0 = vld [vmem:[%s1395_s1 + $0x38] sm:$0xff]  ;;  %v254_v3 = vld [vmem:[%s1395_s1 + $0x30] sm:$0xff]  ;;  %v253_v6 = vld [vmem:[%s1395_s1 + $0x28] sm:$0xff]  ;;  %s244_s10 = scalar_select %p243_p10, %s1122_s25, 1  ;;  %vm264_vm0 = vcmask 261120   ;;  %vm540_vm1 = vcmask 64512  }
  0x14   : > { %v259_v1 = vld [vmem:[%s1395_s1 + $0x58] sm:$0xff]  ;;  %300 = vmatpush.msra.mxu1 %v255_v0  ;;  %v258_v4 = vld [vmem:[%s1395_s1 + $0x50] sm:$0xff]  ;;  %v257_v7 = vld [vmem:[%s1395_s1 + $0x48] sm:$0xff]  ;;  %vm794_vm2 = vcmask 130048   ;;  %vm796_vm3 = vcmask 195584  }
  0x15   : > { %v263_v2 = vld [vmem:[%s1395_s1 + $0x78] sm:$0xff]  ;;  %320 = vmatpush.msra.mxu2 %v259_v1  ;;  %v262_v5 = vld [vmem:[%s1395_s1 + $0x70] sm:$0xff]  ;;  %v261_v8 = vld [vmem:[%s1395_s1 + $0x68] sm:$0xff]  ;;  %s910_s17 = sshll.u32 %s244_s10, 3 }
  0x16   : > { %340 = vmatpush.msra.mxu3 %v263_v2  ;;  %301 = vmatpush.msra.mxu1 %v254_v3  ;;  %v252_v9 = vld [vmem:[%s1395_s1 + $0x20] sm:$0xff]  ;;  %v251_v11 = vld [vmem:[%s1395_s1 + $0x18] sm:$0xff]  ;;  %s246_s9 = scalar_lea.vmem %s1394_s0, %s910_s17  ;;  %v250_v17 = vld [vmem:[%s1395_s1 + $0x10] sm:$0xff]  ;;  %s909_s17 = sshll.u32 %s240_s16, 3 }
  0x17   : > { %321 = vmatpush.msra.mxu2 %v258_v4  ;;  %v256_v10 = vld [vmem:[%s1395_s1 + $0x40] sm:$0xff]  ;;  %280 = vmatpush.msra.mxu0 %v251_v11  ;;  %v355_v14 = vld [vmem:[%s1396_s2 + $0x38] sm:$0xff]  ;;  %v354_v18 = vld [vmem:[%s1396_s2 + $0x30] sm:$0xff] }
  0x18   : > { %341 = vmatpush.msra.mxu3 %v262_v5  ;;  %302 = vmatpush.msra.mxu1 %v253_v6  ;;  %v260_v12 = vld [vmem:[%s1395_s1 + $0x60] sm:$0xff]  ;;  %v359_v15 = vld [vmem:[%s1396_s2 + $0x58] sm:$0xff]  ;;  %v358_v19 = vld [vmem:[%s1396_s2 + $0x50] sm:$0xff] }
  0x19   : > { %322 = vmatpush.msra.mxu2 %v257_v7  ;;  %v1193_v13 = vld [vmem:[%s246_s9] sm:$0xff]  ;;  %v363_v16 = vld [vmem:[%s1396_s2 + $0x78] sm:$0xff]  ;;  %v362_v20 = vld [vmem:[%s1396_s2 + $0x70] sm:$0xff]  ;;  %281 = vmatpush.msra.mxu0 %v250_v17  ;;  %s242_s9 = scalar_lea.vmem [#allocation2], %s909_s17  ;;  %s1019_s17 = scalar_lea.hbm %s1400_s6, 16 }
  0x1a   : > { %342 = vmatpush.msra.mxu3 %v261_v8  ;;  %303 = vmatpush.msra.mxu1 %v252_v9  ;;  %v249_v21 = vld [vmem:[%s1395_s1 + $0x8] sm:$0xff]  ;;  %v248_v25 = vld [vmem:[%s1395_s1] sm:$0xff]  ;;  %v351_v29 = vld [vmem:[%s1396_s2 + $0x18] sm:$0xff]  ;;  %s843_s10 = sshll.u32 %s242_s9, 4  ;;  %s844_s10 = int_to_ptr.vmem [resolvable:$true] %s843_s10 }
  0x1b   : > { %323 = vmatpush.msra.mxu2 %v256_v10  ;;  %912 = vmatmul.msk.f32.vlgmr.msra.gmra.mxu1 %vm264_vm0, %v1193_v13  ;;  %v353_v22 = vld [vmem:[%s1396_s2 + $0x28] sm:$0xff]  ;;  %v352_v26 = vld [vmem:[%s1396_s2 + $0x20] sm:$0xff]  ;;  %v451_v30 = vld [vmem:[%s1397_s3 + $0x38] sm:$0xff] }
  0x1c   : > { %343 = vmatpush.msra.mxu3 %v260_v12  ;;  %913 = vmatmul.msk.f32.vlgmr.msra.gmra.mxu2 %vm264_vm0, %v1193_v13  ;;  %v357_v23 = vld [vmem:[%s1396_s2 + $0x48] sm:$0xff]  ;;  %v356_v27 = vld [vmem:[%s1396_s2 + $0x40] sm:$0xff]  ;;  %v350_v31 = vld [vmem:[%s1396_s2 + $0x10] sm:$0xff] }
  0x1d   : > { %914 = vmatmul.msk.f32.vlgmr.msra.gmra.mxu3 %vm264_vm0, %v1193_v13  ;;  %396 = vmatpush.msrb.mxu1 %v355_v14  ;;  %v361_v24 = vld [vmem:[%s1396_s2 + $0x68] sm:$0xff]  ;;  %v360_v28 = vld [vmem:[%s1396_s2 + $0x60] sm:$0xff]  ;;  %v450_v32 = vld [vmem:[%s1397_s3 + $0x30] sm:$0xff] }
  0x1e   : > { %416 = vmatpush.msrb.mxu2 %v359_v15  ;;  %436 = vmatpush.msrb.mxu3 %v363_v16  ;;  %v349_v33 = vld [vmem:[%s1396_s2 + $0x8] sm:$0xff]  ;;  %v348_v34 = vld [vmem:[%s1396_s2] sm:$0xff]  ;;  %v455_v37 = vld [vmem:[%s1397_s3 + $0x58] sm:$0xff] }
  0x1f   : > { %397 = vmatpush.msrb.mxu1 %v354_v18  ;;  %282 = vmatpush.msra.mxu0 %v249_v21  ;;  %v449_v35 = vld [vmem:[%s1397_s3 + $0x28] sm:$0xff]  ;;  %v448_v36 = vld [vmem:[%s1397_s3 + $0x20] sm:$0xff]  ;;  %v459_v38 = vld [vmem:[%s1397_s3 + $0x78] sm:$0xff] }
  0x20   : > { %417 = vmatpush.msrb.mxu2 %v358_v19  ;;  %437 = vmatpush.msrb.mxu3 %v362_v20  ;;  %v447_v39 = vld [vmem:[%s1397_s3 + $0x18] sm:$0xff]  ;;  %v454_v40 = vld [vmem:[%s1397_s3 + $0x50] sm:$0xff]  ;;  %v453_v43 = vld [vmem:[%s1397_s3 + $0x48] sm:$0xff] }
  0x21   : > { %398 = vmatpush.msrb.mxu1 %v353_v22  ;;  %283 = vmatpush.msra.mxu0 %v248_v25  ;;  %v458_v41 = vld [vmem:[%s1397_s3 + $0x70] sm:$0xff]  ;;  %v457_v44 = vld [vmem:[%s1397_s3 + $0x68] sm:$0xff]  ;;  %v452_v46 = vld [vmem:[%s1397_s3 + $0x40] sm:$0xff] }
  0x22   : > { %418 = vmatpush.msrb.mxu2 %v357_v23  ;;  %438 = vmatpush.msrb.mxu3 %v361_v24  ;;  %v446_v42 = vld [vmem:[%s1397_s3 + $0x10] sm:$0xff]  ;;  %v445_v45 = vld [vmem:[%s1397_s3 + $0x8] sm:$0xff]  ;;  %v456_v47 = vld [vmem:[%s1397_s3 + $0x60] sm:$0xff] }
  0x23   : > { %399 = vmatpush.msrb.mxu1 %v352_v26  ;;  %911 = vmatmul.msk.f32.vlgmr.msra.gmra.mxu0 %vm264_vm0, %v1193_v13  ;;  %v444_v48 = vld [vmem:[%s1397_s3] sm:$0xff] }
  0x24   : > { %419 = vmatpush.msrb.mxu2 %v356_v27  ;;  %439 = vmatpush.msrb.mxu3 %v360_v28 }
  0x25   : > { %916 = vmatmul.msk.f32.vlgmr.msrb.gmra.mxu1 %vm264_vm0, %v1193_v13  ;;  %917 = vmatmul.msk.f32.vlgmr.msrb.gmra.mxu2 %vm264_vm0, %v1193_v13 }
  0x26   : > { %918 = vmatmul.msk.f32.vlgmr.msrb.gmra.mxu3 %vm264_vm0, %v1193_v13  ;;  %376 = vmatpush.msrb.mxu0 %v351_v29 }
  0x27   : > { %492 = vmatpush.msra.mxu1 %v451_v30  ;;  %512 = vmatpush.msra.mxu2 %v455_v37 }
  0x28   : > { %377 = vmatpush.msrb.mxu0 %v350_v31  ;;  %532 = vmatpush.msra.mxu3 %v459_v38 }
  0x29   : > { %493 = vmatpush.msra.mxu1 %v450_v32  ;;  %513 = vmatpush.msra.mxu2 %v454_v40  ;;  %v801_v40 = vld [vmem:[%s1398_s4 + $0x18] sm:$0xff] }
  0x2a   : > { %378 = vmatpush.msrb.mxu0 %v349_v33  ;;  %533 = vmatpush.msra.mxu3 %v458_v41  ;;  %v800_v41 = vld [vmem:[%s1398_s4 + $0x10] sm:$0xff] }
  0x2b   : > { %494 = vmatpush.msra.mxu1 %v449_v35  ;;  %514 = vmatpush.msra.mxu2 %v453_v43  ;;  %v798_v43 = vld [vmem:[%s1398_s4] sm:$0xff] }
  0x2c   : > { %379 = vmatpush.msrb.mxu0 %v348_v34  ;;  %534 = vmatpush.msra.mxu3 %v457_v44 }
  0x2d   : > { %915 = vmatmul.msk.f32.vlgmr.msrb.gmra.mxu0 %vm264_vm0, %v1193_v13  ;;  %495 = vmatpush.msra.mxu1 %v448_v36 }
  0x2e   : > { %472 = vmatpush.msra.mxu0 %v447_v39  ;;  %920 = vmatmul.msk.f32.vlgmr.msra.gmra.mxu1 %vm264_vm0, %v1193_v13 }
  0x2f   : > { %515 = vmatpush.msra.mxu2 %v452_v46  ;;  %535 = vmatpush.msra.mxu3 %v456_v47 }
  0x30   : > { %473 = vmatpush.msra.mxu0 %v446_v42  ;;  %921 = vmatmul.msk.f32.vlgmr.msra.gmra.mxu2 %vm264_vm0, %v1193_v13  ;;  %v799_v42 = vld [vmem:[%s1398_s4 + $0x8] sm:$0xff] }
  0x31   : > { %922 = vmatmul.msk.f32.vlgmr.msra.gmra.mxu3 %vm264_vm0, %v1193_v13 }
  0x32   : > { %474 = vmatpush.msra.mxu0 %v445_v45 }
  0x34   : > { %475 = vmatpush.msra.mxu0 %v444_v48 }
  0x35   : > { %919 = vmatmul.msk.f32.vlgmr.msra.gmra.mxu0 %vm264_vm0, %v1193_v13 }
  0x98   : > { %v305_v49 = vpop.f32.mrf.mxu1 }
  0x9f   : > { %v325_v50 = vpop.f32.mrf.mxu2 }
  0xa0   : > { %v345_v51 = vpop.f32.mrf.mxu3  ;;  %v285_v52 = vpop.f32.mrf.mxu0 }
  0xa2   : > { %v401_v53 = vpop.f32.mrf.mxu1 }
  0xa3   : > { %925 = vmatpush.xpose.msk.msrb.mxu1 %vm540_vm1, %v401_v53 }
  0xa6   : > { %926 = vmatmul.msk.f32.vlgmr.msrb.gmra.mxu1 %vm540_vm1, %v305_v49 }
  0xa8   : > { %v421_v54 = vpop.f32.mrf.mxu2 }
  0xa9   : > { %v441_v55 = vpop.f32.mrf.mxu3  ;;  %927 = vmatpush.xpose.msk.msrb.mxu2 %vm540_vm1, %v421_v54 }
  0xaa   : > { %929 = vmatpush.xpose.msk.msrb.mxu3 %vm540_vm1, %v441_v55  ;;  %v381_v56 = vpop.f32.mrf.mxu0 }
  0xab   : > { %923 = vmatpush.xpose.msk.msrb.mxu0 %vm540_vm1, %v381_v56  ;;  %v497_v57 = vpop.f32.mrf.mxu1 }
  0xac   : > { %928 = vmatmul.msk.f32.vlgmr.msrb.gmra.mxu2 %vm540_vm1, %v325_v50  ;;  %730 = vmatpush.msra.mxu1 %v497_v57 }
  0xad   : > { %930 = vmatmul.msk.f32.vlgmr.msrb.gmra.mxu3 %vm540_vm1, %v345_v51  ;;  %v982_v51 = vld [vmem:[%s1399_s5] ss:$0 sm:$0xff] }
  0xae   : > { %924 = vmatmul.msk.f32.vlgmr.msrb.gmra.mxu0 %vm540_vm1, %v285_v52 }
  0xb2   : > { %v477_v58 = vpop.f32.mrf.mxu0 }
  0xb3   : > { %707 = vmatpush.msra.mxu0 %v477_v58  ;;  %v517_v59 = vpop.f32.mrf.mxu2 }
  0xb4   : > { %v537_v60 = vpop.f32.mrf.mxu3  ;;  %753 = vmatpush.msra.mxu2 %v517_v59 }
  0xb5   : > { %776 = vmatpush.msra.mxu3 %v537_v60  ;;  %821 = vmatpush.msrb.mxu0 %v801_v40 }
  0xb7   : > { %822 = vmatpush.msrb.mxu0 %v800_v41 }
  0xb9   : > { %823 = vmatpush.msrb.mxu0 %v799_v42 }
  0xbb   : > { %824 = vmatpush.msrb.mxu0 %v798_v43 }
 0x123   : > { %v590_v61 = vpop.f32.mrf.mxu1 }
 0x124   : > { %v648_v62 = vsel %vm540_vm1, %v590_v61, -inf }
 0x125   : > { %649 = vmax.xlane.f32.xlu1 %v648_v62 }
 0x12b   : > { %v564_v63 = vpop.f32.mrf.mxu0 }
 0x12c   : > { %v645_v0 = vsel %vm540_vm1, %v564_v63, -inf }
 0x12d   : > { %646 = vmax.xlane.f32.xlu1 %v645_v0 }
 0x12f   : > { %v616_v1 = vpop.f32.mrf.mxu2 }
 0x130   : > { %v651_v2 = vsel %vm540_vm1, %v616_v1, -inf  ;;  %v642_v3 = vpop.f32.mrf.mxu3 }
 0x131   : > { %652 = vmax.xlane.f32.xlu0 %v651_v2  ;;  %v654_v4 = vsel %vm540_vm1, %v642_v3, -inf }
 0x139   : > { %655 = vmax.xlane.f32.xlu0 %v654_v4 }
 0x198   : > { %v650_v5 = vpop.xlane.xlu1 %649 }
 0x199   : > { %v658_v6 = vsub.f32 %v590_v61, %v650_v5 }
 0x19b   : > { %v663_v7 = vmul.f32 1.442695, %v658_v6 }
 0x19d   : > { %983 = vpow2.f32 %v663_v7 }
 0x1a0   : > { %v647_v8 = vpop.xlane.xlu1 %646 }
 0x1a1   : > { %v657_v9 = vsub.f32 %v564_v63, %v647_v8 }
 0x1a3   : > { %v984_v10 = vpop.eup %983  ;;  %v661_v11 = vmul.f32 1.442695, %v657_v9 }
 0x1a4   : > { %v653_v12 = vpop.xlane.xlu0 %652  ;;  %v672_v13 = vsel %vm540_vm1, %v984_v10, 0.0 }
 0x1a5   : > { %985 = vpow2.f32 %v661_v11  ;;  %v659_v14 = vsub.f32 %v616_v1, %v653_v12  ;;  %673 = vadd.xlane.f32.xlu0 %v672_v13 }
 0x1a7   : > { %v665_v15 = vmul.f32 1.442695, %v659_v14 }
 0x1a9   : > { %987 = vpow2.f32 %v665_v15 }
 0x1ab   : > { %v986_v16 = vpop.eup %985 }
 0x1ac   : > { %v656_v17 = vpop.xlane.xlu0 %655  ;;  %v669_v18 = vsel %vm540_vm1, %v986_v16, 0.0 }
 0x1ad   : > { %v660_v19 = vsub.f32 %v642_v3, %v656_v17  ;;  %670 = vadd.xlane.f32.xlu1 %v669_v18 }
 0x1af   : > { %v988_v20 = vpop.eup %987  ;;  %v667_v21 = vmul.f32 1.442695, %v660_v19 }
 0x1b0   : > { %v675_v22 = vsel %vm540_vm1, %v988_v20, 0.0 }
 0x1b1   : > { %989 = vpow2.f32 %v667_v21  ;;  %676 = vadd.xlane.f32.xlu2 %v675_v22 }
 0x1b7   : > { %v990_v23 = vpop.eup %989 }
 0x1b8   : > { %v678_v24 = vsel %vm540_vm1, %v990_v23, 0.0 }
 0x1b9   : > { %679 = vadd.xlane.f32.xlu2 %v678_v24 }
 0x218   : > { %v674_v25 = vpop.xlane.xlu0 %673 }
 0x219   : > { %991 = vrcp.f32 %v674_v25 }
 0x21f   : > { %v992_v26 = vpop.eup %991 }
 0x220   : > { %v686_v27 = vmul.f32 %v992_v26, %v984_v10  ;;  %v671_v28 = vpop.xlane.xlu1 %670 }
 0x221   : > { %993 = vrcp.f32 %v671_v28 }
 0x222   : > { %932 = vmatmul.msk.f32.vlgmr.msra.gmra.mxu1 %vm540_vm1, %v686_v27 }
 0x224   : > { %v677_v29 = vpop.xlane.xlu2 %676 }
 0x225   : > { %995 = vrcp.f32 %v677_v29 }
 0x227   : > { %v994_v30 = vpop.eup %993 }
 0x228   : > { %v685_v31 = vmul.f32 %v994_v30, %v986_v16 }
 0x22a   : > { %931 = vmatmul.msk.f32.vlgmr.msra.gmra.mxu0 %vm540_vm1, %v685_v31 }
 0x22b   : > { %v996_v32 = vpop.eup %995 }
 0x22c   : > { %v687_v33 = vmul.f32 %v996_v32, %v988_v20  ;;  %v680_v34 = vpop.xlane.xlu2 %679 }
 0x22d   : > { %997 = vrcp.f32 %v680_v34 }
 0x22e   : > { %933 = vmatmul.msk.f32.vlgmr.msra.gmra.mxu2 %vm540_vm1, %v687_v33 }
 0x233   : > { %v998_v35 = vpop.eup %997 }
 0x234   : > { %v688_v36 = vmul.f32 %v998_v35, %v990_v23 }
 0x236   : > { %934 = vmatmul.msk.f32.vlgmr.msra.gmra.mxu3 %vm540_vm1, %v688_v36 }
 0x29f   : > { %v732_v37 = vpop.f32.mrf.mxu1 }
 0x2a0   : > { %782 = vrot.lane.b32.xlu2 %v732_v37, %s1063_s20 }
 0x2a7   : > { %v709_v46 = vpop.f32.mrf.mxu0 }
 0x2b1   : > { %v755_v38 = vpop.f32.mrf.mxu2 }
 0x2b2   : > { %786 = vrot.lane.b32.xlu0 %v755_v38, %s1064_s26  ;;  %s841_s26 = scalar_lea.hbm %s1400_s6, %s937_s18 }
 0x2b3   : > { %s845_s11 = sshll.u32 %s841_s26, 4  ;;  %s846_s11 = int_to_ptr.hbm [resolvable:$true] %s845_s11 }
 0x2b4   : > { %s1013_s25 = sshra.s32 %s846_s11, 4  ;;  %s1014_s25 = int_to_ptr.hbm [resolvable:$true] %s1013_s25 }
 0x2b5   : > { %s1015_s13 = scalar_lea.hbm %s1014_s25, 8  ;;  %p1020_p0 = scmp.lt.s32.totalorder %s1014_s25, %s1400_s6 }
 0x2b6   : > { %p1016_p11 = scmp.ne.s32.totalorder %s1014_s25, %s1015_s13  ;;  %p1021_p1 = scmp.lt.s32.totalorder %s1019_s17, %s1015_s13 }
 0x2b8   : > { %p1017_p12 = pnand %p1016_p11, %p1139_p5  ;;  %p1022_p2 = por %p1021_p1, %p1020_p0 }
 0x2b9   : > { %v778_v39 = vpop.f32.mrf.mxu3 }
 0x2ba   : > { %790 = vrot.lane.b32.xlu1 %v778_v39, %s1065_s28  ;;  %p1018_p13 = pneg %p1017_p12 }
 0x2bc   : > { %p1023_p3 = pnand %p1022_p2, %p1018_p13 }
 0x2fa   : > { %v783_v44 = vpop.permute.xlu2 %782 }
 0x2fb   : > { %v793_v47 = vsel %vm540_vm1, %v709_v46, %v783_v44 }
 0x324   : > { %v787_v45 = vpop.permute.xlu0 %786 }
 0x325   : > { %v795_v48 = vsel %vm794_vm2, %v793_v47, %v787_v45 }
 0x32c   : > { %v791_v49 = vpop.permute.xlu1 %790 }
 0x32d   : > { %v797_v50 = vsel %vm796_vm3, %v795_v48, %v791_v49 }
 0x32e   : > { %935 = vmatmul.msk.f32.vlgmr.msrb.gmra.mxu0 %vm264_vm0, %v797_v50 }
 0x3ab   : > { %v826_v52 = vpop.f32.mrf.mxu0 }
 0x3ac   : > { %v827_v53 = vadd.f32 %v982_v51, %v826_v52 }
 0x3ae   : > { %829 = vst.msk [vmem:[%s242_s9] sm:$0xff] %vm264_vm0, %v827_v53 }
 0x3af   : > { %1026 = shalt.err (!%p1023_p3)
}
 0x3b0   : > { %940 = dma.vmem_to_hbm [thread:$0]  (%p1139_p5), %s844_s10, 128, %s846_s11, %s831_s12  }
 0x3b1 PF: > { %p946_p4 = scmp.ge.s32.totalorder %s1061_s24, 2  ;;  %s857_s16 = sand.u32 1, %s1049_s21  }
 0x3b2   : > { %s858_s20 = scalar_lea.sflag [#allocation3], %s857_s16 }
 0x3b3   : > { %p943_p7 = pnand %p946_p4, %p1143_p6 }
 0x3b5   : > { %p944_p8 = pneg %p943_p7 }
 0x3b7   : > { %1044 = dma.done.wait (%p944_p8), %s858_s20, 128  }
 0x3b8   : > { %1046 = vsyncadd (%p944_p8), %s858_s20, 4294967168  ;;  %p16_p9 = scmp.ge.s32.totalorder %s1126_s27, 4   ;;  %s1403_s21 = smov %s1053_s22 }
 0x3b9   : > { %s1404_s22 = smov %s1057_s23  ;;  %s1405_s23 = smov %s1137_s30 }
 0x3ba   : > { %s1406_s24 = smov %s1126_s27  ;;  %18 = sbr.rel (!%p16_p9) target bundleno = 3 (0x3), region = 79 }
 0x3bf   :  { %864 = vsyncpa [#allocation3], 1 }
 0x3c0   :  { %866 = vsyncpa [#allocation3 + $0x1], 1 }

</bundles_post_ra>
